<compile_context>
chip_gen: v7x
topology: tpu7x:2x2x1
jax: 0.10.0
libtpu: 0.0.40
codegen_flags: <defaults>
</compile_context>

<pallas_src>
import functools

import jax
import jax.numpy as jnp
from jax.experimental import pallas as pl
from jax.experimental.pallas import tpu as pltpu


def _round_up(x, m):
    return ((x + m - 1) // m) * m


def _leaky_relu(x, slope=0.2):
    return jnp.where(x > 0, x, slope * x)


def _softplus(x):
    # numerically stable softplus: max(x, 0) + log1p(exp(-|x|))
    return jnp.maximum(x, 0.0) + jnp.log1p(jnp.exp(-jnp.abs(x)))


def mi_estimator_kernel(
    x1_ref,    # [TB, s1]   bf16
    x1r_ref,   # [TB, s1]   bf16   (x1 rolled by 1 along the batch, pre-pad)
    x2_ref,    # [TB, s2]   bf16
    w1a_ref,   # [s1, 512]  bf16   (W1 rows that multiply x1)
    w1b_ref,   # [s2, 512]  bf16   (W1 rows that multiply x2)
    b1_ref,    # [1, 512]   f32
    w2_ref,    # [512, 256] bf16
    b2_ref,    # [1, 256]   f32
    w3_ref,    # [1, 256]   f32    (Linear(256,1) weight as a row)
    b3_ref,    # [1, 1]     f32
    out_ref,   # [1, 1]     f32    (resident accumulator across the grid)
    *,
    true_b,    # real batch size (mean divisor / row mask)
    tb,        # batch tile size
):
    i = pl.program_id(0)

    @pl.when(i == 0)
    def _():
        out_ref[...] = jnp.zeros_like(out_ref)

    # Parameter reads / broadcasts hoisted: single fused MLP pass per tile.
    b1 = b1_ref[...]
    b2 = b2_ref[...]
    w3 = w3_ref[...]
    b3 = b3_ref[...]

    # Stack pos rows (x1) and neg rows (rolled x1) along the batch axis.
    x1s = jnp.concatenate([x1_ref[...], x1r_ref[...]], axis=0)     # [2TB, s1]

    # Layer 1: x1-part matmul for both branches in one MXU pass; the x2-part
    # (+ bias) is identical for pos and neg -> compute once, reuse.
    h1 = jnp.dot(x1s, w1a_ref[...],
                 preferred_element_type=jnp.float32)               # [2TB, 512]
    shared = jnp.dot(x2_ref[...], w1b_ref[...],
                     preferred_element_type=jnp.float32) + b1      # [TB, 512]
    h1 = _leaky_relu(h1 + jnp.concatenate([shared, shared], axis=0))

    # Layer 2.
    h2 = jnp.dot(h1.astype(jnp.bfloat16), w2_ref[...],
                 preferred_element_type=jnp.float32)               # [2TB, 256]
    h2 = _leaky_relu(h2 + b2)

    # Layer 3 Linear(256, 1): broadcast-mul + lane reduce (XLU), no lane-1 matmul.
    s = jnp.sum(h2 * w3, axis=-1, keepdims=True) + b3              # [2TB, 1]

    pos = s[:tb]
    neg = s[tb:]

    # Mask padded rows of the last tile out of the reduction.
    row = i * tb + jax.lax.broadcasted_iota(jnp.int32, (tb, 1), 0)
    valid = (row < true_b).astype(jnp.float32)

    sp_pos = jnp.sum(_softplus(-pos) * valid)
    sp_neg = jnp.sum(_softplus(neg) * valid)

    # -mean(softplus(-pos)) - mean(softplus(neg)) accumulated tile by tile.
    out_ref[...] = out_ref[...] + (-(sp_pos + sp_neg) * (1.0 / true_b))


def mi_estimator_forward(x1, x2, params):
    """Pallas implementation of MIEstimator.forward(x1, x2)."""
    w1, b1, w2, b2, w3, b3 = params        # w1: [s1+s2, 512] (transposed vs torch)
    B, s1 = x1.shape
    s2 = x2.shape[1]
    h1_dim, h2_dim = w1.shape[1], w2.shape[1]

    # Batch roll (torch.roll(x1, 1, 0)) on the un-padded batch so the
    # wraparound row is correct regardless of batch tiling.
    x1r = jnp.roll(x1, 1, axis=0)

    # Batch tiling: TB multiple of 8 (sublane), capped at 128 rows per tile.
    TB = min(128, _round_up(B, 8))
    Bp = _round_up(B, TB)
    pad = Bp - B
    if pad:
        x1 = jnp.pad(x1, ((0, pad), (0, 0)))
        x1r = jnp.pad(x1r, ((0, pad), (0, 0)))
        x2 = jnp.pad(x2, ((0, pad), (0, 0)))

    # bf16 matmul operands (f32 accumulation inside the kernel).
    x1_b = x1.astype(jnp.bfloat16)
    x1r_b = x1r.astype(jnp.bfloat16)
    x2_b = x2.astype(jnp.bfloat16)
    w1a = w1[:s1].astype(jnp.bfloat16)
    w1b = w1[s1:].astype(jnp.bfloat16)
    w2_b = w2.astype(jnp.bfloat16)

    grid = (Bp // TB,)

    def x_spec(d):
        return pl.BlockSpec((TB, d), lambda i: (i, 0))

    def resident(shape):
        # constant index_map -> weight block stays in VMEM, no re-DMA per tile
        return pl.BlockSpec(shape, lambda i: (0, 0))

    flops = 2 * Bp * (2 * s1 * h1_dim + s2 * h1_dim + 2 * h1_dim * h2_dim)
    bytes_accessed = (
        (2 * Bp * s1 + Bp * s2) * 2                      # bf16 activations
        + (s1 * h1_dim + s2 * h1_dim + h1_dim * h2_dim) * 2   # bf16 weights
        + (h1_dim + h2_dim + h2_dim + 1) * 4             # f32 biases + w3
        + 4                                              # scalar output
    )
    cost = pl.CostEstimate(flops=flops, transcendentals=4 * Bp,
                           bytes_accessed=bytes_accessed)

    kernel = functools.partial(mi_estimator_kernel, true_b=B, tb=TB)

    out = pl.pallas_call(
        kernel,
        out_shape=jax.ShapeDtypeStruct((1, 1), jnp.float32),
        grid_spec=pltpu.PrefetchScalarGridSpec(
            num_scalar_prefetch=0,
            grid=grid,
            in_specs=[
                x_spec(s1),                 # x1
                x_spec(s1),                 # rolled x1
                x_spec(s2),                 # x2
                resident((s1, h1_dim)),     # w1a
                resident((s2, h1_dim)),     # w1b
                resident((1, h1_dim)),      # b1
                resident((h1_dim, h2_dim)), # w2
                resident((1, h2_dim)),      # b2
                resident((1, h2_dim)),      # w3 (row)
                resident((1, 1)),           # b3
            ],
            out_specs=pl.BlockSpec((1, 1), lambda i: (0, 0)),
        ),
        compiler_params=pltpu.CompilerParams(
            dimension_semantics=("arbitrary",),     # reduction into one scalar
            vmem_limit_bytes=32 * 1024 * 1024,
        ),
        cost_estimate=cost,
    )(x1_b, x1r_b, x2_b, w1a, w1b, b1, w2_b, b2, w3, b3)
    return out[0, 0]


def mi_estimator_reference(x1, x2, params):
    """Pure-JAX reference matching the PyTorch forward (f32 everywhere)."""
    w1, b1, w2, b2, w3, b3 = params

    def net(x):
        h = _leaky_relu(x @ w1 + b1)
        h = _leaky_relu(h @ w2 + b2)
        return h @ w3.T + b3

    pos = net(jnp.concatenate([x1, x2], axis=1))
    neg = net(jnp.concatenate([jnp.roll(x1, 1, axis=0), x2], axis=1))
    return -jnp.mean(_softplus(-pos)) - jnp.mean(_softplus(neg))


def init_params(key, size1, size2):
    """Deterministic synthetic parameters matching the PyTorch module shapes.

    PyTorch Linear weights are [out, in]; stored here transposed [in, out].
    """
    d_in = size1 + size2
    k1, k2, k3, k4, k5, k6 = jax.random.split(key, 6)
    w1 = jax.random.normal(k1, (d_in, 512), jnp.float32) / jnp.sqrt(d_in)
    b1 = 0.01 * jax.random.normal(k4, (1, 512), jnp.float32)
    w2 = jax.random.normal(k2, (512, 256), jnp.float32) / jnp.sqrt(512.0)
    b2 = 0.01 * jax.random.normal(k5, (1, 256), jnp.float32)
    w3 = jax.random.normal(k3, (1, 256), jnp.float32) / jnp.sqrt(256.0)
    b3 = 0.01 * jax.random.normal(k6, (1, 1), jnp.float32)
    return (w1, b1, w2, b2, w3, b3)


if __name__ == "__main__":
    B, SIZE1, SIZE2 = 8, 32, 32
    key = jax.random.PRNGKey(0)
    kx1, kx2, kp = jax.random.split(key, 3)
    x1 = jax.random.normal(kx1, (B, SIZE1), jnp.float32)
    x2 = jax.random.normal(kx2, (B, SIZE2), jnp.float32)
    params = init_params(kp, SIZE1, SIZE2)

    result = jax.block_until_ready(mi_estimator_forward(x1, x2, params))
    ref = jax.block_until_ready(mi_estimator_reference(x1, x2, params))

    assert result.shape == ()
    assert bool(jnp.isfinite(result))
    # bf16 matmul operands / f32 accumulation: loose tolerance vs f32 reference.
    assert bool(jnp.allclose(result, ref, rtol=5e-2, atol=5e-2)), (result, ref)
    print("KERNEL_OK")
</pallas_src>

<mosaic_0001>
module attributes {stable_mosaic.version = 11 : i64} {
  func.func @mi_estimator_kernel(%arg0: i32, %arg1: memref<8x32xbf16, #tpu.memory_space<vmem>>, %arg2: memref<8x32xbf16, #tpu.memory_space<vmem>>, %arg3: memref<8x32xbf16, #tpu.memory_space<vmem>>, %arg4: memref<32x512xbf16, #tpu.memory_space<vmem>>, %arg5: memref<32x512xbf16, #tpu.memory_space<vmem>>, %arg6: memref<1x512xf32, #tpu.memory_space<vmem>>, %arg7: memref<512x256xbf16, #tpu.memory_space<vmem>>, %arg8: memref<1x256xf32, #tpu.memory_space<vmem>>, %arg9: memref<1x256xf32, #tpu.memory_space<vmem>>, %arg10: memref<1x1xf32, #tpu.memory_space<vmem>>, %arg11: memref<1x1xf32, #tpu.memory_space<vmem>>) attributes {dimension_semantics = [#tpu.dimension_semantics<arbitrary>], iteration_bounds = array<i64: 1>, scalar_prefetch = 0 : i64, scratch_operands = 0 : i64, tpu.core_type = #tpu.core_type<tc>, window_params = [{transform_indices = @transform_0, window_bounds = array<i64: 8, 32>}, {transform_indices = @transform_1, window_bounds = array<i64: 8, 32>}, {transform_indices = @transform_2, window_bounds = array<i64: 8, 32>}, {pipeline_mode = #tpu.pipeline_mode<synchronous>, transform_indices = @transform_3, window_bounds = array<i64: 32, 512>}, {pipeline_mode = #tpu.pipeline_mode<synchronous>, transform_indices = @transform_4, window_bounds = array<i64: 32, 512>}, {pipeline_mode = #tpu.pipeline_mode<synchronous>, transform_indices = @transform_5, window_bounds = array<i64: 1, 512>}, {pipeline_mode = #tpu.pipeline_mode<synchronous>, transform_indices = @transform_6, window_bounds = array<i64: 512, 256>}, {pipeline_mode = #tpu.pipeline_mode<synchronous>, transform_indices = @transform_7, window_bounds = array<i64: 1, 256>}, {pipeline_mode = #tpu.pipeline_mode<synchronous>, transform_indices = @transform_8, window_bounds = array<i64: 1, 256>}, {pipeline_mode = #tpu.pipeline_mode<synchronous>, transform_indices = @transform_9, window_bounds = array<i64: 1, 1>}, {pipeline_mode = #tpu.pipeline_mode<synchronous>, transform_indices = @transform_10, window_bounds = array<i64: 1, 1>}]} {
    %c0_i32 = arith.constant 0 : i32
    %0 = arith.cmpi eq, %arg0, %c0_i32 : i32
    %1 = arith.extui %0 : i1 to i32
    %c0_i32_0 = arith.constant 0 : i32
    %2 = arith.cmpi ne, %1, %c0_i32_0 : i32
    scf.if %2 {
      %cst_41 = arith.constant 0.000000e+00 : f32
      %85 = vector.broadcast %cst_41 : f32 to vector<1x1xf32>
      %c0_42 = arith.constant 0 : index
      %c0_43 = arith.constant 0 : index
      %86 = vector.load %arg11[%c0_42, %c0_43] : memref<1x1xf32, #tpu.memory_space<vmem>>, vector<1x1xf32>
      tpu.vector_store %arg11[%c0_42, %c0_43], %85 {strides = array<i32>} : memref<1x1xf32, #tpu.memory_space<vmem>>, vector<1x1xf32>,
    } else {
    }
    %c0 = arith.constant 0 : index
    %c0_1 = arith.constant 0 : index
    %3 = vector.load %arg6[%c0, %c0_1] : memref<1x512xf32, #tpu.memory_space<vmem>>, vector<1x512xf32>
    %c0_2 = arith.constant 0 : index
    %c0_3 = arith.constant 0 : index
    %4 = vector.load %arg8[%c0_2, %c0_3] : memref<1x256xf32, #tpu.memory_space<vmem>>, vector<1x256xf32>
    %c0_4 = arith.constant 0 : index
    %c0_5 = arith.constant 0 : index
    %5 = vector.load %arg9[%c0_4, %c0_5] : memref<1x256xf32, #tpu.memory_space<vmem>>, vector<1x256xf32>
    %c0_6 = arith.constant 0 : index
    %c0_7 = arith.constant 0 : index
    %6 = vector.load %arg10[%c0_6, %c0_7] : memref<1x1xf32, #tpu.memory_space<vmem>>, vector<1x1xf32>
    %c0_8 = arith.constant 0 : index
    %c0_9 = arith.constant 0 : index
    %7 = vector.load %arg1[%c0_8, %c0_9] : memref<8x32xbf16, #tpu.memory_space<vmem>>, vector<8x32xbf16>
    %c0_10 = arith.constant 0 : index
    %c0_11 = arith.constant 0 : index
    %8 = vector.load %arg2[%c0_10, %c0_11] : memref<8x32xbf16, #tpu.memory_space<vmem>>, vector<8x32xbf16>
    %9 = tpu.concatenate %7, %8 in 0 : vector<8x32xbf16>, vector<8x32xbf16> -> vector<16x32xbf16>
    %c0_12 = arith.constant 0 : index
    %c0_13 = arith.constant 0 : index
    %10 = vector.load %arg4[%c0_12, %c0_13] : memref<32x512xbf16, #tpu.memory_space<vmem>>, vector<32x512xbf16>
    %cst = arith.constant dense<0.000000e+00> : vector<16x512xf32>
    %11 = tpu.matmul %9, %10, %cst {dimension_numbers = #tpu.dot_dimension_numbers<[1], [0], [0], [1], [0, 0, 1, 1], [], []>} : vector<16x32xbf16>, vector<32x512xbf16>, vector<16x512xf32> -> vector<16x512xf32>
    %c0_14 = arith.constant 0 : index
    %c0_15 = arith.constant 0 : index
    %12 = vector.load %arg3[%c0_14, %c0_15] : memref<8x32xbf16, #tpu.memory_space<vmem>>, vector<8x32xbf16>
    %c0_16 = arith.constant 0 : index
    %c0_17 = arith.constant 0 : index
    %13 = vector.load %arg5[%c0_16, %c0_17] : memref<32x512xbf16, #tpu.memory_space<vmem>>, vector<32x512xbf16>
    %cst_18 = arith.constant dense<0.000000e+00> : vector<8x512xf32>
    %14 = tpu.matmul %12, %13, %cst_18 {dimension_numbers = #tpu.dot_dimension_numbers<[1], [0], [0], [1], [0, 0, 1, 1], [], []>} : vector<8x32xbf16>, vector<32x512xbf16>, vector<8x512xf32> -> vector<8x512xf32>
    %15 = vector.broadcast %3 : vector<1x512xf32> to vector<8x512xf32>
    %16 = arith.addf %14, %15 : vector<8x512xf32>
    %17 = tpu.concatenate %16, %16 in 0 : vector<8x512xf32>, vector<8x512xf32> -> vector<16x512xf32>
    %18 = arith.addf %11, %17 : vector<16x512xf32>
    %cst_19 = arith.constant 0.000000e+00 : f32
    %19 = vector.broadcast %cst_19 : f32 to vector<16x512xf32>
    %20 = arith.cmpf ogt, %18, %19 : vector<16x512xf32>
    %cst_20 = arith.constant 2.000000e-01 : f32
    %21 = vector.broadcast %cst_20 : f32 to vector<16x512xf32>
    %22 = arith.mulf %21, %18 : vector<16x512xf32>
    %23 = arith.select %20, %18, %22 : vector<16x512xi1>, vector<16x512xf32>
    %24 = arith.truncf %23 : vector<16x512xf32> to vector<16x512xbf16>
    %c0_21 = arith.constant 0 : index
    %c0_22 = arith.constant 0 : index
    %25 = vector.load %arg7[%c0_21, %c0_22] : memref<512x256xbf16, #tpu.memory_space<vmem>>, vector<512x256xbf16>
    %cst_23 = arith.constant dense<0.000000e+00> : vector<16x256xf32>
    %26 = tpu.matmul %24, %25, %cst_23 {dimension_numbers = #tpu.dot_dimension_numbers<[1], [0], [0], [1], [0, 0, 1, 1], [], []>} : vector<16x512xbf16>, vector<512x256xbf16>, vector<16x256xf32> -> vector<16x256xf32>
    %27 = vector.broadcast %4 : vector<1x256xf32> to vector<16x256xf32>
    %28 = arith.addf %26, %27 : vector<16x256xf32>
    %cst_24 = arith.constant 0.000000e+00 : f32
    %29 = vector.broadcast %cst_24 : f32 to vector<16x256xf32>
    %30 = arith.cmpf ogt, %28, %29 : vector<16x256xf32>
    %cst_25 = arith.constant 2.000000e-01 : f32
    %31 = vector.broadcast %cst_25 : f32 to vector<16x256xf32>
    %32 = arith.mulf %31, %28 : vector<16x256xf32>
    %33 = arith.select %30, %28, %32 : vector<16x256xi1>, vector<16x256xf32>
    %34 = vector.broadcast %5 : vector<1x256xf32> to vector<16x256xf32>
    %35 = arith.mulf %33, %34 : vector<16x256xf32>
    %cst_26 = arith.constant dense<0.000000e+00> : vector<16xf32>
    %36 = vector.multi_reduction <add>, %35, %cst_26 [1] : vector<16x256xf32> to vector<16xf32>
    %37 = vector.shape_cast %36 : vector<16xf32> to vector<16x1xf32>
    %38 = vector.broadcast %6 : vector<1x1xf32> to vector<16x1xf32>
    %39 = arith.addf %37, %38 : vector<16x1xf32>
    %40 = vector.extract_strided_slice %39 {offsets = [0, 0], sizes = [8, 1], strides = [1, 1]} : vector<16x1xf32> to vector<8x1xf32>
    %41 = vector.extract_strided_slice %39 {offsets = [8, 0], sizes = [8, 1], strides = [1, 1]} : vector<16x1xf32> to vector<8x1xf32>
    %c8_i32 = arith.constant 8 : i32
    %42 = arith.muli %arg0, %c8_i32 : i32
    %43 = tpu.iota {dimensions = array<i32: 0>} : vector<8x1xi32>
    %44 = vector.broadcast %42 : i32 to vector<8x1xi32>
    %45 = arith.addi %44, %43 : vector<8x1xi32>
    %c8_i32_27 = arith.constant 8 : i32
    %46 = vector.broadcast %c8_i32_27 : i32 to vector<8x1xi32>
    %47 = arith.cmpi slt, %45, %46 : vector<8x1xi32>
    %48 = arith.extui %47 : vector<8x1xi1> to vector<8x1xi32>
    %49 = arith.sitofp %48 : vector<8x1xi32> to vector<8x1xf32>
    %cst_28 = arith.constant 0.000000e+00 : f32
    %50 = vector.broadcast %cst_28 : f32 to vector<8x1xf32>
    %51 = arith.subf %50, %40 : vector<8x1xf32>
    %cst_29 = arith.constant 0.000000e+00 : f32
    %52 = vector.broadcast %cst_29 : f32 to vector<8x1xf32>
    %53 = arith.maximumf %51, %52 : vector<8x1xf32>
    %54 = math.absf %51 : vector<8x1xf32>
    %cst_30 = arith.constant 0.000000e+00 : f32
    %55 = vector.broadcast %cst_30 : f32 to vector<8x1xf32>
    %56 = arith.subf %55, %54 : vector<8x1xf32>
    %57 = math.exp %56 : vector<8x1xf32>
    %58 = math.log1p %57 : vector<8x1xf32>
    %59 = arith.addf %53, %58 : vector<8x1xf32>
    %60 = arith.mulf %59, %49 : vector<8x1xf32>
    %61 = vector.shape_cast %60 : vector<8x1xf32> to vector<1x8x1xf32>
    %cst_31 = arith.constant dense<0.000000e+00> : vector<1xf32>
    %62 = vector.multi_reduction <add>, %61, %cst_31 [1, 2] : vector<1x8x1xf32> to vector<1xf32>
    %63 = vector.shape_cast %62 : vector<1xf32> to vector<1x1x1xf32>
    %64 = vector.extract %63[0, 0, 0] : f32 from vector<1x1x1xf32>
    %cst_32 = arith.constant 0.000000e+00 : f32
    %65 = vector.broadcast %cst_32 : f32 to vector<8x1xf32>
    %66 = arith.maximumf %41, %65 : vector<8x1xf32>
    %67 = math.absf %41 : vector<8x1xf32>
    %cst_33 = arith.constant 0.000000e+00 : f32
    %68 = vector.broadcast %cst_33 : f32 to vector<8x1xf32>
    %69 = arith.subf %68, %67 : vector<8x1xf32>
    %70 = math.exp %69 : vector<8x1xf32>
    %71 = math.log1p %70 : vector<8x1xf32>
    %72 = arith.addf %66, %71 : vector<8x1xf32>
    %73 = arith.mulf %72, %49 : vector<8x1xf32>
    %74 = vector.shape_cast %73 : vector<8x1xf32> to vector<1x8x1xf32>
    %cst_34 = arith.constant dense<0.000000e+00> : vector<1xf32>
    %75 = vector.multi_reduction <add>, %74, %cst_34 [1, 2] : vector<1x8x1xf32> to vector<1xf32>
    %76 = vector.shape_cast %75 : vector<1xf32> to vector<1x1x1xf32>
    %77 = vector.extract %76[0, 0, 0] : f32 from vector<1x1x1xf32>
    %c0_35 = arith.constant 0 : index
    %c0_36 = arith.constant 0 : index
    %78 = vector.load %arg11[%c0_35, %c0_36] : memref<1x1xf32, #tpu.memory_space<vmem>>, vector<1x1xf32>
    %79 = arith.addf %64, %77 : f32
    %cst_37 = arith.constant 0.000000e+00 : f32
    %80 = arith.subf %cst_37, %79 : f32
    %cst_38 = arith.constant 1.250000e-01 : f32
    %81 = arith.mulf %80, %cst_38 : f32
    %82 = vector.broadcast %81 : f32 to vector<1x1xf32>
    %83 = arith.addf %78, %82 : vector<1x1xf32>
    %c0_39 = arith.constant 0 : index
    %c0_40 = arith.constant 0 : index
    %84 = vector.load %arg11[%c0_39, %c0_40] : memref<1x1xf32, #tpu.memory_space<vmem>>, vector<1x1xf32>
    tpu.vector_store %arg11[%c0_39, %c0_40], %83 {strides = array<i32>} : memref<1x1xf32, #tpu.memory_space<vmem>>, vector<1x1xf32>,
    return
  }
  func.func @transform_0(%arg0: i32) -> (i32, i32) {
    %c0_i32 = arith.constant 0 : i32
    %c0_i32_0 = arith.constant 0 : i32
    return %arg0, %c0_i32 : i32, i32
  }
  func.func @transform_1(%arg0: i32) -> (i32, i32) {
    %c0_i32 = arith.constant 0 : i32
    %c0_i32_0 = arith.constant 0 : i32
    return %arg0, %c0_i32 : i32, i32
  }
  func.func @transform_2(%arg0: i32) -> (i32, i32) {
    %c0_i32 = arith.constant 0 : i32
    %c0_i32_0 = arith.constant 0 : i32
    return %arg0, %c0_i32 : i32, i32
  }
  func.func @transform_3(%arg0: i32) -> (i32, i32) {
    %c0_i32 = arith.constant 0 : i32
    %c0_i32_0 = arith.constant 0 : i32
    %c0_i32_1 = arith.constant 0 : i32
    return %c0_i32, %c0_i32_0 : i32, i32
  }
  func.func @transform_4(%arg0: i32) -> (i32, i32) {
    %c0_i32 = arith.constant 0 : i32
    %c0_i32_0 = arith.constant 0 : i32
    %c0_i32_1 = arith.constant 0 : i32
    return %c0_i32, %c0_i32_0 : i32, i32
  }
  func.func @transform_5(%arg0: i32) -> (i32, i32) {
    %c0_i32 = arith.constant 0 : i32
    %c0_i32_0 = arith.constant 0 : i32
    %c0_i32_1 = arith.constant 0 : i32
    return %c0_i32, %c0_i32_0 : i32, i32
  }
  func.func @transform_6(%arg0: i32) -> (i32, i32) {
    %c0_i32 = arith.constant 0 : i32
    %c0_i32_0 = arith.constant 0 : i32
    %c0_i32_1 = arith.constant 0 : i32
    return %c0_i32, %c0_i32_0 : i32, i32
  }
  func.func @transform_7(%arg0: i32) -> (i32, i32) {
    %c0_i32 = arith.constant 0 : i32
    %c0_i32_0 = arith.constant 0 : i32
    %c0_i32_1 = arith.constant 0 : i32
    return %c0_i32, %c0_i32_0 : i32, i32
  }
  func.func @transform_8(%arg0: i32) -> (i32, i32) {
    %c0_i32 = arith.constant 0 : i32
    %c0_i32_0 = arith.constant 0 : i32
    %c0_i32_1 = arith.constant 0 : i32
    return %c0_i32, %c0_i32_0 : i32, i32
  }
  func.func @transform_9(%arg0: i32) -> (i32, i32) {
    %c0_i32 = arith.constant 0 : i32
    %c0_i32_0 = arith.constant 0 : i32
    %c0_i32_1 = arith.constant 0 : i32
    return %c0_i32, %c0_i32_0 : i32, i32
  }
  func.func @transform_10(%arg0: i32) -> (i32, i32) {
    %c0_i32 = arith.constant 0 : i32
    %c0_i32_0 = arith.constant 0 : i32
    %c0_i32_1 = arith.constant 0 : i32
    return %c0_i32, %c0_i32_0 : i32, i32
  }
}

</mosaic_0001>

<bundles_post_ra>
// kernel: tpu_custom_call.1
= control target key start
LH: loop header
LB: loop body
LE: loop exit
PB: predicated region body
PF: predicated region fallthrough
CT: control target
= control target key end

     0   :  { %s1564_s0 = inlined_call_operand.hbm [shape: bf16[8,32], index: 0, kind: input, shape index: {}]   ;;  %s1565_s1 = inlined_call_operand.vmem [shape: bf16[8,32], index: 1, kind: input, shape index: {}]   ;;  %s1566_s2 = inlined_call_operand.vmem [shape: bf16[8,32], index: 2, kind: input, shape index: {}]   ;;  %s1567_s3 = inlined_call_operand.hbm [shape: bf16[32,512], index: 3, kind: input, shape index: {}]   ;;  %s1568_s4 = inlined_call_operand.hbm [shape: bf16[32,512], index: 4, kind: input, shape index: {}]   ;;  %s1569_s5 = inlined_call_operand.vmem [shape: f32[1,512], index: 5, kind: input, shape index: {}]   ;;  %s1570_s6 = inlined_call_operand.hbm [shape: bf16[512,256], index: 6, kind: input, shape index: {}]   ;;  %s1571_s7 = inlined_call_operand.vmem [shape: f32[1,256], index: 7, kind: input, shape index: {}]   ;;  %s1572_s8 = inlined_call_operand.vmem [shape: f32[1,256], index: 8, kind: input, shape index: {}]   ;;  %s1573_s9 = inlined_call_operand.<no memory space> [shape: f32[1,1], index: 9, kind: input, shape index: {}]   ;;  %s1574_s10 = inlined_call_operand.hbm [shape: f32[1,1], index: 10, kind: output, shape index: {}]  }
   0x1   :  { %v15_v0 = vstv %s1573_s9 }
   0x2   :  { %16 = vst [vmem:[#allocation2] sm:$0x1] %v15_v0 }
   0x3   :  { %17 = vsyncpa [#allocation4], 0 }
   0x4   :  { %18 = vsyncpa [#allocation7], 0 }
   0x5   :  { %19 = vsyncpa [#allocation10], 0 }
   0x6   :  { %20 = vsyncpa [#allocation5], 0  ;;  %s1396_s15 = smov [#allocation6]   ;;  %s1278_s19 = scalar_lea.hbm %s1567_s3, 1024 }
   0x7   :  { %s40_s16 = sshll.u32 %s1396_s15, 4  ;;  %p1279_p0 = scmp.ne.s32.totalorder %s1567_s3, %s1278_s19  ;;  %s41_s16 = int_to_ptr.vmem [resolvable:$true] %s40_s16 }
   0x8   :  { %p1282_p1 = scmp.lt.u32.totalorder %s1278_s19, %s1567_s3 }
   0xa   :  { %p1284_p2 = pnand %p1282_p1, %p1279_p0 }
   0xc   :  { %1287 = shalt.err (!%p1284_p2)
}
   0xd   :  { %s1288_s9 = scalar_lea.vmem %s41_s16, 1024  ;;  %p1293_p4 = scmp.lt.s32.totalorder %s41_s16, %s41_s16 }
   0xe   :  { %p1289_p3 = scmp.ne.s32.totalorder %s41_s16, %s1288_s9  ;;  %p1294_p5 = scmp.lt.s32.totalorder %s1288_s9, %s1288_s9 }
  0x10   :  { %p1295_p6 = por %p1294_p5, %p1293_p4 }
  0x12   :  { %p1296_p7 = pnand %p1295_p6, %p1289_p3 }
  0x14   :  { %1299 = shalt.err (!%p1296_p7)
}
  0x15   :  { %s1397_s24 = smov 256   ;;  %s1398_s25 = smov 16  }
  0x16   :  { %46 = dma.hbm_to_vmem [thread:$0]  %s1567_s3, 1024, %s41_s16, [#allocation7], %s1397_s24, %s1397_s24, %s1398_s25  }
  0x17   :  { %s1399_s28 = smov [#allocation3]   ;;  %s1400_s30 = smov [#allocation8]  }
  0x18   :  { %s27_s29 = sshll.u32 %s1399_s28, 4  ;;  %s52_s11 = sshll.u32 %s1400_s30, 4  ;;  %s28_s29 = int_to_ptr.vmem [resolvable:$true] %s27_s29  ;;  %s53_s11 = int_to_ptr.vmem [resolvable:$true] %s52_s11 }
  0x19   :  { %s1300_s14 = scalar_lea.hbm %s1564_s0, 64 }
  0x1a   :  { %p1301_p8 = scmp.ne.s32.totalorder %s1564_s0, %s1300_s14  ;;  %p1304_p9 = scmp.lt.u32.totalorder %s1300_s14, %s1564_s0 }
  0x1c   :  { %p1306_p10 = pnand %p1304_p9, %p1301_p8 }
  0x1e   :  { %1309 = shalt.err (!%p1306_p10)
}
  0x1f   :  { %s1310_s3 = scalar_lea.vmem %s28_s29, 64  ;;  %p1315_p12 = scmp.lt.s32.totalorder %s28_s29, %s28_s29 }
  0x20   :  { %p1311_p11 = scmp.ne.s32.totalorder %s28_s29, %s1310_s3  ;;  %p1316_p13 = scmp.lt.s32.totalorder %s1310_s3, %s1310_s3 }
  0x22   :  { %p1317_p0 = por %p1316_p13, %p1315_p12 }
  0x24   :  { %p1318_p1 = pnand %p1317_p0, %p1311_p11 }
  0x26   :  { %1321 = shalt.err (!%p1318_p1)
}
  0x27   :  { %30 = dma.hbm_to_vmem [thread:$0]  %s1564_s0, 64, %s28_s29, [#allocation4]  }
  0x28   :  { %s1322_s23 = scalar_lea.hbm %s1568_s4, 1024 }
  0x29   :  { %p1323_p2 = scmp.ne.s32.totalorder %s1568_s4, %s1322_s23  ;;  %p1326_p3 = scmp.lt.u32.totalorder %s1322_s23, %s1568_s4 }
  0x2b   :  { %p1328_p4 = pnand %p1326_p3, %p1323_p2 }
  0x2d   :  { %1331 = shalt.err (!%p1328_p4)
}
  0x2e   :  { %s1332_s30 = scalar_lea.vmem %s53_s11, 1024  ;;  %p1337_p6 = scmp.lt.s32.totalorder %s53_s11, %s53_s11 }
  0x2f   :  { %p1333_p5 = scmp.ne.s32.totalorder %s53_s11, %s1332_s30  ;;  %p1338_p7 = scmp.lt.s32.totalorder %s1332_s30, %s1332_s30 }
  0x31   :  { %p1339_p8 = por %p1338_p7, %p1337_p6 }
  0x33   :  { %p1340_p9 = pnand %p1339_p8, %p1333_p5 }
  0x35   :  { %1343 = shalt.err (!%p1340_p9)
}
  0x36   :  { %58 = dma.hbm_to_vmem [thread:$0]  %s1568_s4, 1024, %s53_s11, [#allocation7], %s1397_s24, %s1397_s24, %s1398_s25  }
  0x37   :  { %s1401_s12 = smov [#allocation9]   ;;  %s1344_s17 = scalar_lea.hbm %s1570_s6, 8192 }
  0x38   :  { %s66_s13 = sshll.u32 %s1401_s12, 4  ;;  %p1345_p10 = scmp.ne.s32.totalorder %s1570_s6, %s1344_s17  ;;  %s67_s13 = int_to_ptr.vmem [resolvable:$true] %s66_s13 }
  0x39   :  { %p1348_p11 = scmp.lt.u32.totalorder %s1344_s17, %s1570_s6 }
  0x3b   :  { %p1350_p12 = pnand %p1348_p11, %p1345_p10 }
  0x3d   :  { %1353 = shalt.err (!%p1350_p12)
}
  0x3e   :  { %s1354_s20 = scalar_lea.vmem %s67_s13, 8192  ;;  %p1359_p0 = scmp.lt.s32.totalorder %s67_s13, %s67_s13 }
  0x3f   :  { %p1355_p13 = scmp.ne.s32.totalorder %s67_s13, %s1354_s20  ;;  %p1360_p1 = scmp.lt.s32.totalorder %s1354_s20, %s1354_s20 }
  0x41   :  { %p1361_p2 = por %p1360_p1, %p1359_p0 }
  0x43   :  { %p1362_p3 = pnand %p1361_p2, %p1355_p13 }
  0x45   :  { %1365 = shalt.err (!%p1362_p3)
}
  0x46   :  { %s1402_s4 = smov 128   ;;  %s1403_s24 = smov 8  }
  0x47   :  { %72 = dma.hbm_to_vmem [thread:$0]  %s1570_s6, 8192, %s67_s13, [#allocation10], %s1402_s4, %s1402_s4, %s1403_s24  }
  0x48   :  { %1388 = dma.done.wait [#allocation4], 64  }
  0x49   :  { %1389 = vsyncadd [#allocation4], 4294967232 }
  0x4a   :  { %1390 = dma.done.wait [#allocation7], 2048  }
  0x4b   :  { %1391 = vsyncadd [#allocation7], 4294965248 }
  0x4c   :  { %1392 = dma.done.wait [#allocation10], 8192  }
  0x4d   :  { %1393 = vsyncadd [#allocation10], 4294959104  ;;  %v1404_v1 = vmov 0   ;;  %v1149_v2 = vld [vmem:[#allocation8 + $0x4] ss:$16 sps:$4 sm:$0xff]   ;;  %vm189_vm0 = vcmask 261120  }
  0x4e   :  { %225 = vmatprep.mubr.bf16.mxu0 %v1404_v1  ;;  %266 = vmatprep.mubr.bf16.mxu1 %v1404_v1  ;;  %v1151_v3 = vld [vmem:[#allocation8 + $0xc] ss:$16 sps:$4 sm:$0xff]   ;;  %v1153_v4 = vld [vmem:[#allocation8] ss:$16 sps:$4 sm:$0xff]   ;;  %v1154_v5 = vld [vmem:[#allocation8 + $0x8] ss:$16 sps:$4 sm:$0xff]  }
  0x4f   :  { %193 = vmatprep.subr.bf16.mxu0 %v1149_v2  ;;  %234 = vmatprep.subr.bf16.mxu1 %v1151_v3  ;;  %v1155_v6 = vld [vmem:[#allocation8 + $0x24] ss:$16 sps:$4 sm:$0xff]   ;;  %v1157_v7 = vld [vmem:[#allocation8 + $0x2c] ss:$16 sps:$4 sm:$0xff]   ;;  %v1159_v8 = vld [vmem:[#allocation8 + $0x20] ss:$16 sps:$4 sm:$0xff]  }
  0x50   :  { %194 = vmatpush1.bf16.msra.mxu0 %v1153_v4  ;;  %235 = vmatpush1.bf16.msra.mxu1 %v1154_v5  ;;  %v1160_v9 = vld [vmem:[#allocation8 + $0x28] ss:$16 sps:$4 sm:$0xff]   ;;  %v1161_v11 = vld [vmem:[#allocation6] ss:$16 sps:$4 sm:$0xff]   ;;  %v1163_v12 = vld [vmem:[#allocation6 + $0x4] ss:$16 sps:$4 sm:$0xff]  }
  0x51   :  { %195 = vmatprep.subr.bf16.mxu0 %v1155_v6  ;;  %236 = vmatprep.subr.bf16.mxu1 %v1157_v7  ;;  %v119_v10 = vld [vmem:[%s1566_s2] sm:$0xf]  ;;  %v1169_v15 = vld [vmem:[#allocation6 + $0x24] ss:$16 sps:$4 sm:$0xff]   ;;  %v1167_v16 = vld [vmem:[#allocation6 + $0x20] ss:$16 sps:$4 sm:$0xff]  }
  0x52   :  { %v1164_v13 = vld [vmem:[#allocation6 + $0x8] ss:$16 sps:$4 sm:$0xff]   ;;  %v1166_v14 = vld [vmem:[#allocation6 + $0xc] ss:$16 sps:$4 sm:$0xff]   ;;  %vm107_vm1 = vcmask 1043456   ;;  %vm978_vm15 = vcmask 7168  }
  0x53   :  { %v1172_v17 = vld [vmem:[#allocation6 + $0x2c] ss:$16 sps:$4 sm:$0xff]   ;;  %v1170_v18 = vld [vmem:[#allocation6 + $0x28] ss:$16 sps:$4 sm:$0xff]   ;;  %s1406_s29 = smov [#allocation11]  }
  0x54   :  { %196 = vmatpush1.bf16.msra.mxu0 %v1159_v8  ;;  %237 = vmatpush1.bf16.msra.mxu1 %v1160_v9  ;;  %v102_v19 = vld [vmem:[#allocation3] sm:$0xf]  ;;  %v1173_v20 = vld [vmem:[%s1565_s1] ss:$0 sps:$4 sm:$0xff]   ;;  %v1176_v21 = vld [vmem:[#allocation9 + $0x4] ss:$8 sps:$4 sm:$0xff]  }
  0x55   :  { %317 = vmatprep.subr.bf16.mxu0 %v1163_v12  ;;  %360 = vmatprep.subr.bf16.mxu1 %v1166_v14  ;;  %v1179_v22 = vld [vmem:[#allocation9 + $0x104] ss:$8 sps:$4 sm:$0xff]   ;;  %v1174_v23 = vld [vmem:[#allocation9] ss:$8 sps:$4 sm:$0xff]   ;;  %v110_v25 = vsel %vm107_vm1, %v102_v19, %v1173_v20  ;;  %v1182_v26 = vld [vmem:[#allocation9 + $0x14] ss:$8 sps:$4 sm:$0xff]  }
  0x56   :  { %v1177_v24 = vld [vmem:[#allocation9 + $0x100] ss:$8 sps:$4 sm:$0xff]   ;;  %v1185_v27 = vld [vmem:[#allocation9 + $0x114] ss:$8 sps:$4 sm:$0xff]   ;;  %v1180_v28 = vld [vmem:[#allocation9 + $0x10] ss:$8 sps:$4 sm:$0xff]  }
  0x57   :  { %1049 = vmatmul.mubr.msk.bf16.vlgmr.msra.gmra.mrb[0].mxu0 %vm189_vm0, %v119_v10  ;;  %1050 = vmatmul.mubr.msk.bf16.vlgmr.msra.gmra.mrb[0].mxu1 %vm189_vm0, %v119_v10  ;;  %v1183_v29 = vld [vmem:[#allocation9 + $0x110] ss:$8 sps:$4 sm:$0xff]   ;;  %v1188_v30 = vld [vmem:[#allocation9 + $0x24] ss:$8 sps:$4 sm:$0xff]   ;;  %v1186_v32 = vld [vmem:[#allocation9 + $0x20] ss:$8 sps:$4 sm:$0xff]  }
  0x58   :  { %318 = vmatpush1.bf16.msra.mxu0 %v1161_v11  ;;  %361 = vmatpush1.bf16.msra.mxu1 %v1164_v13  ;;  %v1191_v31 = vld [vmem:[#allocation9 + $0x124] ss:$8 sps:$4 sm:$0xff]   ;;  %v1189_v33 = vld [vmem:[#allocation9 + $0x120] ss:$8 sps:$4 sm:$0xff]   ;;  %v1194_v34 = vld [vmem:[#allocation9 + $0x34] ss:$8 sps:$4 sm:$0xff]  }
  0x59   :  { %319 = vmatprep.subr.bf16.mxu0 %v1169_v15  ;;  %362 = vmatprep.subr.bf16.mxu1 %v1172_v17  ;;  %v1197_v35 = vld [vmem:[#allocation9 + $0x134] ss:$8 sps:$4 sm:$0xff]   ;;  %v1192_v36 = vld [vmem:[#allocation9 + $0x30] ss:$8 sps:$4 sm:$0xff]   ;;  %v1200_v38 = vld [vmem:[#allocation9 + $0x44] ss:$8 sps:$4 sm:$0xff]  }
  0x5a   :  { %349 = vmatprep.mubr.bf16.mxu0 %v1404_v1  ;;  %392 = vmatprep.mubr.bf16.mxu1 %v1404_v1  ;;  %v1195_v37 = vld [vmem:[#allocation9 + $0x130] ss:$8 sps:$4 sm:$0xff]   ;;  %v1203_v39 = vld [vmem:[#allocation9 + $0x144] ss:$8 sps:$4 sm:$0xff]   ;;  %v1198_v40 = vld [vmem:[#allocation9 + $0x40] ss:$8 sps:$4 sm:$0xff]  }
  0x5b   :  { %v1201_v41 = vld [vmem:[#allocation9 + $0x140] ss:$8 sps:$4 sm:$0xff]   ;;  %v1206_v42 = vld [vmem:[#allocation9 + $0x54] ss:$8 sps:$4 sm:$0xff]   ;;  %v1204_v44 = vld [vmem:[#allocation9 + $0x50] ss:$8 sps:$4 sm:$0xff]  }
  0x5c   :  { %320 = vmatpush1.bf16.msra.mxu0 %v1167_v16  ;;  %363 = vmatpush1.bf16.msra.mxu1 %v1170_v18  ;;  %v1209_v43 = vld [vmem:[#allocation9 + $0x154] ss:$8 sps:$4 sm:$0xff]   ;;  %v1207_v45 = vld [vmem:[#allocation9 + $0x150] ss:$8 sps:$4 sm:$0xff]   ;;  %v1212_v46 = vld [vmem:[#allocation9 + $0x64] ss:$8 sps:$4 sm:$0xff]  }
  0x5d   :  { %826 = vmatprep.subr.bf16.mxu1 %v1176_v21  ;;  %869 = vmatprep.subr.bf16.mxu0 %v1179_v22  ;;  %v1215_v47 = vld [vmem:[#allocation9 + $0x164] ss:$8 sps:$4 sm:$0xff]   ;;  %v1210_v48 = vld [vmem:[#allocation9 + $0x60] ss:$8 sps:$4 sm:$0xff]   ;;  %v1218_v50 = vld [vmem:[#allocation9 + $0x74] ss:$8 sps:$4 sm:$0xff]   ;;  %v129_v22 = vlaneseq }
  0x5e   :  { %v1213_v49 = vld [vmem:[#allocation9 + $0x160] ss:$8 sps:$4 sm:$0xff]   ;;  %v1221_v51 = vld [vmem:[#allocation9 + $0x174] ss:$8 sps:$4 sm:$0xff]   ;;  %v1216_v52 = vld [vmem:[#allocation9 + $0x70] ss:$8 sps:$4 sm:$0xff]  }
  0x5f   :  { %1059 = vmatmul.mubr.msk.bf16.vlgmr.msra.gmra.mrb[4].mxu0 %vm189_vm0, %v110_v25  ;;  %1060 = vmatmul.mubr.msk.bf16.vlgmr.msra.gmra.mrb[4].mxu1 %vm189_vm0, %v110_v25  ;;  %v1219_v53 = vld [vmem:[#allocation9 + $0x170] ss:$8 sps:$4 sm:$0xff]   ;;  %v1224_v54 = vld [vmem:[#allocation9 + $0x84] ss:$8 sps:$4 sm:$0xff]   ;;  %v1222_v56 = vld [vmem:[#allocation9 + $0x80] ss:$8 sps:$4 sm:$0xff]  }
  0x60   :  { %827 = vmatpush1.bf16.msra.mxu1 %v1174_v23  ;;  %870 = vmatpush1.bf16.msra.mxu0 %v1177_v24  ;;  %v1227_v55 = vld [vmem:[#allocation9 + $0x184] ss:$8 sps:$4 sm:$0xff]   ;;  %v1225_v57 = vld [vmem:[#allocation9 + $0x180] ss:$8 sps:$4 sm:$0xff]   ;;  %v1230_v58 = vld [vmem:[#allocation9 + $0x94] ss:$8 sps:$4 sm:$0xff]  }
  0x61   :  { %828 = vmatprep.subr.bf16.mxu1 %v1182_v26  ;;  %871 = vmatprep.subr.bf16.mxu0 %v1185_v27  ;;  %v1233_v59 = vld [vmem:[#allocation9 + $0x194] ss:$8 sps:$4 sm:$0xff]   ;;  %v1228_v60 = vld [vmem:[#allocation9 + $0x90] ss:$8 sps:$4 sm:$0xff]   ;;  %v1236_v62 = vld [vmem:[#allocation9 + $0xa4] ss:$8 sps:$4 sm:$0xff]  }
  0x62   :  { %v1231_v61 = vld [vmem:[#allocation9 + $0x190] ss:$8 sps:$4 sm:$0xff]   ;;  %v1239_v63 = vld [vmem:[#allocation9 + $0x1a4] ss:$8 sps:$4 sm:$0xff]   ;;  %v1234_v0 = vld [vmem:[#allocation9 + $0xa0] ss:$8 sps:$4 sm:$0xff]  }
  0x63   :  { %v1237_v1 = vld [vmem:[#allocation9 + $0x1a0] ss:$8 sps:$4 sm:$0xff]   ;;  %v1242_v2 = vld [vmem:[#allocation9 + $0xb4] ss:$8 sps:$4 sm:$0xff]   ;;  %v1240_v4 = vld [vmem:[#allocation9 + $0xb0] ss:$8 sps:$4 sm:$0xff]  }
  0x64   :  { %829 = vmatpush1.bf16.msra.mxu1 %v1180_v28  ;;  %872 = vmatpush1.bf16.msra.mxu0 %v1183_v29  ;;  %v1245_v3 = vld [vmem:[#allocation9 + $0x1b4] ss:$8 sps:$4 sm:$0xff]   ;;  %v1243_v5 = vld [vmem:[#allocation9 + $0x1b0] ss:$8 sps:$4 sm:$0xff]   ;;  %v1248_v6 = vld [vmem:[#allocation9 + $0xc4] ss:$8 sps:$4 sm:$0xff]  }
  0x65   :  { %830 = vmatprep.subr.bf16.mxu1 %v1188_v30  ;;  %873 = vmatprep.subr.bf16.mxu0 %v1191_v31  ;;  %v1251_v7 = vld [vmem:[#allocation9 + $0x1c4] ss:$8 sps:$4 sm:$0xff]   ;;  %v1246_v8 = vld [vmem:[#allocation9 + $0xc0] ss:$8 sps:$4 sm:$0xff]   ;;  %v1254_v10 = vld [vmem:[#allocation9 + $0xd4] ss:$8 sps:$4 sm:$0xff]  }
  0x66   :  { %v1249_v9 = vld [vmem:[#allocation9 + $0x1c0] ss:$8 sps:$4 sm:$0xff]   ;;  %v1257_v11 = vld [vmem:[#allocation9 + $0x1d4] ss:$8 sps:$4 sm:$0xff]   ;;  %v1252_v12 = vld [vmem:[#allocation9 + $0xd0] ss:$8 sps:$4 sm:$0xff]  }
  0x67   :  { %v1255_v13 = vld [vmem:[#allocation9 + $0x1d0] ss:$8 sps:$4 sm:$0xff]   ;;  %v1260_v14 = vld [vmem:[#allocation9 + $0xe4] ss:$8 sps:$4 sm:$0xff]   ;;  %v1258_v16 = vld [vmem:[#allocation9 + $0xe0] ss:$8 sps:$4 sm:$0xff]  }
  0x68   :  { %831 = vmatpush1.bf16.msra.mxu1 %v1186_v32  ;;  %874 = vmatpush1.bf16.msra.mxu0 %v1189_v33  ;;  %v1263_v15 = vld [vmem:[#allocation9 + $0x1e4] ss:$8 sps:$4 sm:$0xff]   ;;  %v1261_v17 = vld [vmem:[#allocation9 + $0x1e0] ss:$8 sps:$4 sm:$0xff]   ;;  %v1266_v18 = vld [vmem:[#allocation9 + $0xf4] ss:$8 sps:$4 sm:$0xff]  }
  0x69   :  { %832 = vmatprep.subr.bf16.mxu1 %v1194_v34  ;;  %875 = vmatprep.subr.bf16.mxu0 %v1197_v35  ;;  %v1269_v19 = vld [vmem:[#allocation9 + $0x1f4] ss:$8 sps:$4 sm:$0xff]   ;;  %v1264_v20 = vld [vmem:[#allocation9 + $0xf0] ss:$8 sps:$4 sm:$0xff]   ;;  %v130_v23 = vshrl.u32 %v129_v22, 7  ;;  %vm96_vm1 = vcmask 0  }
  0x6a   :  { %v1267_v21 = vld [vmem:[#allocation9 + $0x1f0] ss:$8 sps:$4 sm:$0xff]   ;;  %s1029_s12 = sshll.u32 %s1406_s29, 4  ;;  %s1030_s12 = int_to_ptr.vmem [resolvable:$true] %s1029_s12 }
  0x6b   :  { %v1529_v24 = vsub.s32 0, %v130_v23  ;;  %v139_v25 = vsub.s32 2, %v130_v23  ;;  %v98_v26 = vld [vmem:[%s1569_s5] sm:$0xf]  ;;  %v1534_v29 = vsub.s32 1, %v130_v23  ;;  %v143_v30 = vsub.s32 3, %v130_v23  ;;  %p1371_p5 = scmp.lt.s32.totalorder %s1030_s12, %s1030_s12 }
  0x6c   :  { %833 = vmatpush1.bf16.msra.mxu1 %v1192_v36  ;;  %876 = vmatpush1.bf16.msra.mxu0 %v1195_v37  ;;  %s1366_s13 = scalar_lea.vmem %s1030_s12, 16  ;;  %s1370_s14 = scalar_lea.vmem %s1030_s12, 32 }
  0x6d   :  { %834 = vmatprep.subr.bf16.mxu1 %v1200_v38  ;;  %877 = vmatprep.subr.bf16.mxu0 %v1203_v39  ;;  %v132_v35 = vrot.slane %v98_v26, %v1529_v24  ;;  %v140_v36 = vrot.slane %v98_v26, %v139_v25  ;;  %v136_v39 = vrot.slane %v98_v26, %v1534_v29  ;;  %p1367_p4 = scmp.ne.s32.totalorder %s1030_s12, %s1366_s13  ;;  %p1372_p6 = scmp.lt.s32.totalorder %s1370_s14, %s1366_s13 }
  0x6f   :  { %p1373_p7 = por %p1372_p6, %p1371_p5 }
  0x70   :  { %835 = vmatpush1.bf16.msra.mxu1 %v1198_v40  ;;  %878 = vmatpush1.bf16.msra.mxu0 %v1201_v41  ;;  %v144_v40 = vrot.slane %v98_v26, %v143_v30  ;;  %v100_v26 = vld [vmem:[%s1572_s8] sm:$0x3] }
  0x71   :  { %836 = vmatprep.subr.bf16.mxu1 %v1206_v42  ;;  %879 = vmatprep.subr.bf16.mxu0 %v1209_v43  ;;  %p1374_p8 = pnand %p1373_p7, %p1367_p4 }
  0x74   :  { %837 = vmatpush1.bf16.msra.mxu1 %v1204_v44  ;;  %880 = vmatpush1.bf16.msra.mxu0 %v1207_v45 }
  0x75   :  { %838 = vmatprep.subr.bf16.mxu1 %v1212_v46  ;;  %881 = vmatprep.subr.bf16.mxu0 %v1215_v47 }
  0x78   :  { %839 = vmatpush1.bf16.msra.mxu1 %v1210_v48  ;;  %882 = vmatpush1.bf16.msra.mxu0 %v1213_v49 }
  0x79   :  { %840 = vmatprep.subr.bf16.mxu1 %v1218_v50  ;;  %883 = vmatprep.subr.bf16.mxu0 %v1221_v51 }
  0x7c   :  { %841 = vmatpush1.bf16.msra.mxu1 %v1216_v52  ;;  %884 = vmatpush1.bf16.msra.mxu0 %v1219_v53 }
  0x7d   :  { %842 = vmatprep.subr.bf16.mxu1 %v1224_v54  ;;  %885 = vmatprep.subr.bf16.mxu0 %v1227_v55 }
  0x80   :  { %843 = vmatpush1.bf16.msra.mxu1 %v1222_v56  ;;  %886 = vmatpush1.bf16.msra.mxu0 %v1225_v57 }
  0x81   :  { %844 = vmatprep.subr.bf16.mxu1 %v1230_v58  ;;  %887 = vmatprep.subr.bf16.mxu0 %v1233_v59 }
  0x84   :  { %845 = vmatpush1.bf16.msra.mxu1 %v1228_v60  ;;  %888 = vmatpush1.bf16.msra.mxu0 %v1231_v61 }
  0x85   :  { %846 = vmatprep.subr.bf16.mxu1 %v1236_v62  ;;  %889 = vmatprep.subr.bf16.mxu0 %v1239_v63 }
  0x88   :  { %847 = vmatpush1.bf16.msra.mxu1 %v1234_v0  ;;  %890 = vmatpush1.bf16.msra.mxu0 %v1237_v1 }
  0x89   :  { %848 = vmatprep.subr.bf16.mxu1 %v1242_v2  ;;  %891 = vmatprep.subr.bf16.mxu0 %v1245_v3 }
  0x8c   :  { %849 = vmatpush1.bf16.msra.mxu1 %v1240_v4  ;;  %892 = vmatpush1.bf16.msra.mxu0 %v1243_v5 }
  0x8d   :  { %850 = vmatprep.subr.bf16.mxu1 %v1248_v6  ;;  %893 = vmatprep.subr.bf16.mxu0 %v1251_v7 }
  0x90   :  { %851 = vmatpush1.bf16.msra.mxu1 %v1246_v8  ;;  %894 = vmatpush1.bf16.msra.mxu0 %v1249_v9 }
  0x91   :  { %852 = vmatprep.subr.bf16.mxu1 %v1254_v10  ;;  %895 = vmatprep.subr.bf16.mxu0 %v1257_v11 }
  0x94   :  { %853 = vmatpush1.bf16.msra.mxu1 %v1252_v12  ;;  %896 = vmatpush1.bf16.msra.mxu0 %v1255_v13 }
  0x95   :  { %854 = vmatprep.subr.bf16.mxu1 %v1260_v14  ;;  %897 = vmatprep.subr.bf16.mxu0 %v1263_v15 }
  0x98   :  { %855 = vmatpush1.bf16.msra.mxu1 %v1258_v16  ;;  %898 = vmatpush1.bf16.msra.mxu0 %v1261_v17  ;;  %v99_v17 = vld [vmem:[%s1571_s7] sm:$0x3] }
  0x99   :  { %856 = vmatprep.subr.bf16.mxu1 %v1266_v18  ;;  %899 = vmatprep.subr.bf16.mxu0 %v1269_v19  ;;  %v499_v18 = vrot.slane %v99_v17, %v1529_v24  ;;  %v503_v19 = vrot.slane %v99_v17, %v1534_v29 }
  0x9c   :  { %857 = vmatpush1.bf16.msra.mxu1 %v1264_v20  ;;  %900 = vmatpush1.bf16.msra.mxu0 %v1267_v21 }
 0x12a   :  { %v227_v27 = vpop.f32.mrb[0].mxu0  ;;  %v268_v28 = vpop.f32.mrb[0].mxu1 }
 0x12b   :  { %v229_v31 = vpop.f32.mrb[1].mxu0  ;;  %v270_v32 = vpop.f32.mrb[1].mxu1  ;;  %v228_v41 = vadd.f32 %v227_v27, %v132_v35  ;;  %v269_v42 = vadd.f32 %v268_v28, %v140_v36 }
 0x12c   :  { %v231_v33 = vpop.f32.mrb[2].mxu0  ;;  %v272_v34 = vpop.f32.mrb[2].mxu1  ;;  %v230_v43 = vadd.f32 %v229_v31, %v136_v39  ;;  %v271_v44 = vadd.f32 %v270_v32, %v144_v40  ;;  %v932_v40 = vrot.slane %v100_v26, %v1534_v29  ;;  %v1125_v29 = vld [vmem:[#allocation2] ss:$0 sm:$0xff] }
 0x12d   :  { %v232_v37 = vpop.f32.mrb[3].mxu0  ;;  %v273_v38 = vpop.f32.mrb[3].mxu1 }
 0x12e   :  { %v928_v37 = vrot.slane %v100_v26, %v1529_v24  ;;  %v1405_v26 = vmov 0.0  }
 0x12f   :  { %97 = vst.msk [vmem:[#allocation11] sm:$0x1] %vm96_vm1, %v1405_v26 }
 0x132   :  { %v351_v45 = vpop.f32.mrb[4].mxu0  ;;  %v394_v46 = vpop.f32.mrb[4].mxu1 }
 0x133   :  { %v352_v47 = vadd.f32 %v351_v45, %v228_v41  ;;  %v395_v48 = vadd.f32 %v394_v46, %v269_v42  ;;  %v353_v49 = vpop.f32.mrb[5].mxu0  ;;  %v396_v50 = vpop.f32.mrb[5].mxu1 }
 0x134   :  { %v354_v51 = vadd.f32 %v353_v49, %v230_v43  ;;  %v397_v52 = vadd.f32 %v396_v50, %v271_v44  ;;  %v355_v53 = vpop.f32.mrb[6].mxu0  ;;  %v398_v54 = vpop.f32.mrb[6].mxu1 }
 0x135   :  { %vm403_vm2 = vcmp.gt.f32.partialorder %v352_v47, 0.0  ;;  %v411_v55 = vmul.f32 0.2, %v352_v47  ;;  %vm405_vm3 = vcmp.gt.f32.partialorder %v395_v48, 0.0  ;;  %v413_v56 = vmul.f32 0.2, %v395_v48 }
 0x136   :  { %vm404_vm4 = vcmp.gt.f32.partialorder %v354_v51, 0.0  ;;  %v412_v57 = vmul.f32 0.2, %v354_v51  ;;  %vm406_vm5 = vcmp.gt.f32.partialorder %v397_v52, 0.0  ;;  %v414_v58 = vmul.f32 0.2, %v397_v52 }
 0x137   :  { %v356_v59 = vadd.f32 %v355_v53, %v228_v41  ;;  %v399_v60 = vadd.f32 %v398_v54, %v269_v42  ;;  %v357_v61 = vpop.f32.mrb[7].mxu0  ;;  %v400_v62 = vpop.f32.mrb[7].mxu1  ;;  %v419_v63 = vsel %vm403_vm2, %v352_v47, %v411_v55  ;;  %v421_v0 = vsel %vm405_vm3, %v395_v48, %v413_v56 }
 0x138   :  { %v358_v1 = vadd.f32 %v357_v61, %v230_v43  ;;  %v401_v2 = vadd.f32 %v400_v62, %v271_v44  ;;  %v420_v9 = vsel %vm404_vm4, %v354_v51, %v412_v57  ;;  %v422_v10 = vsel %vm406_vm5, %v397_v52, %v414_v58 }
 0x139   :  { %vm407_vm6 = vcmp.gt.f32.partialorder %v356_v59, 0.0  ;;  %v415_v3 = vmul.f32 0.2, %v356_v59  ;;  %vm409_vm7 = vcmp.gt.f32.partialorder %v399_v60, 0.0  ;;  %v417_v4 = vmul.f32 0.2, %v399_v60 }
 0x13a   :  { %vm408_vm8 = vcmp.gt.f32.partialorder %v358_v1, 0.0  ;;  %v416_v5 = vmul.f32 0.2, %v358_v1  ;;  %vm410_vm9 = vcmp.gt.f32.partialorder %v401_v2, 0.0  ;;  %v418_v6 = vmul.f32 0.2, %v401_v2 }
 0x13b   :  { %v423_v7 = vsel %vm407_vm6, %v356_v59, %v415_v3  ;;  %v425_v8 = vsel %vm409_vm7, %v399_v60, %v417_v4 }
 0x13c   :  { %v427_v11 = vpack.c.bf16 %v423_v7, %v419_v63  ;;  %v429_v12 = vpack.c.bf16 %v425_v8, %v421_v0  ;;  %v424_v13 = vsel %vm408_vm8, %v358_v1, %v416_v5  ;;  %v426_v14 = vsel %vm410_vm9, %v401_v2, %v418_v6 }
 0x13d   :  { %v428_v15 = vpack.c.bf16 %v424_v13, %v420_v9  ;;  %v430_v16 = vpack.c.bf16 %v426_v14, %v422_v10 }
 0x13f   :  { %858 = vmatprep.mubr.bf16.mxu1 %v428_v15  ;;  %901 = vmatprep.mubr.bf16.mxu0 %v430_v16 }
 0x140   :  { %859 = vmatmul.mubr.bf16.vlgmr.msra.gmra.mrb[8].mxu1 %v427_v11  ;;  %902 = vmatmul.mubr.bf16.vlgmr.msra.gmra.mrb[8].mxu0 %v429_v12 }
 0x213   :  { %v860_v20 = vpop.f32.mrb[8].mxu1  ;;  %v903_v21 = vpop.f32.mrb[8].mxu0 }
 0x214   :  { %v861_v22 = vadd.f32 %v860_v20, %v499_v18  ;;  %v862_v23 = vpop.f32.mrb[9].mxu1  ;;  %v905_v25 = vpop.f32.mrb[9].mxu0 }
 0x215   :  { %v863_v27 = vadd.f32 %v862_v23, %v503_v19  ;;  %v864_v28 = vpop.f32.mrb[10].mxu1  ;;  %v907_v30 = vpop.f32.mrb[10].mxu0 }
 0x216   :  { %v904_v31 = vadd.f32 %v903_v21, %v861_v22  ;;  %v865_v32 = vadd.f32 %v864_v28, %v499_v18  ;;  %v866_v33 = vpop.f32.mrb[11].mxu1  ;;  %v909_v34 = vpop.f32.mrb[11].mxu0 }
 0x217   :  { %v906_v35 = vadd.f32 %v905_v25, %v863_v27  ;;  %v867_v36 = vadd.f32 %v866_v33, %v503_v19 }
 0x218   :  { %vm912_vm10 = vcmp.gt.f32.partialorder %v904_v31, 0.0  ;;  %v916_v38 = vmul.f32 0.2, %v904_v31  ;;  %v908_v39 = vadd.f32 %v907_v30, %v865_v32 }
 0x219   :  { %vm913_vm11 = vcmp.gt.f32.partialorder %v906_v35, 0.0  ;;  %v917_v41 = vmul.f32 0.2, %v906_v35  ;;  %v910_v42 = vadd.f32 %v909_v34, %v867_v36 }
 0x21a   :  { %vm914_vm12 = vcmp.gt.f32.partialorder %v908_v39, 0.0  ;;  %v918_v43 = vmul.f32 0.2, %v908_v39  ;;  %v920_v44 = vsel %vm912_vm10, %v904_v31, %v916_v38 }
 0x21b   :  { %vm915_vm13 = vcmp.gt.f32.partialorder %v910_v42, 0.0  ;;  %v919_v45 = vmul.f32 0.2, %v910_v42  ;;  %v921_v46 = vsel %vm913_vm11, %v906_v35, %v917_v41  ;;  %v935_v47 = vmul.f32 %v928_v37, %v920_v44 }
 0x21c   :  { %v936_v48 = vmul.f32 %v932_v40, %v921_v46  ;;  %v922_v49 = vsel %vm914_vm12, %v908_v39, %v918_v43 }
 0x21d   :  { %v923_v50 = vsel %vm915_vm13, %v910_v42, %v919_v45  ;;  %v937_v51 = vmul.f32 %v928_v37, %v922_v49  ;;  %v1015_v42 = vld [vmem:[#allocation11] sm:$0x1] }
 0x21e   :  { %v939_v24 = vadd.f32 %v936_v48, %v935_v47  ;;  %v938_v52 = vmul.f32 %v932_v40, %v923_v50 }
 0x220   :  { %940 = vadd.xlane.f32.xlu0 %v939_v24  ;;  %v942_v53 = vadd.f32 %v938_v52, %v937_v51 }
 0x224   :  { %943 = vadd.xlane.f32.xlu0 %v942_v53 }
 0x2ad   :  { %v941_v54 = vpop.xlane.xlu0 %940 }
 0x2ae   :  { %v951_v55 = vadd.f32 %v1125_v29, %v941_v54 }
 0x2b0   :  { %v961_v56 = vsub.f32 0.0, %v951_v55 }
 0x2b1   :  { %v944_v57 = vpop.xlane.xlu0 %943 }
 0x2b2   :  { %v963_v58 = vand.u32 2147483647, %v961_v56  ;;  %v952_v59 = vadd.f32 %v1125_v29, %v944_v57  ;;  %v962_v15 = vmax.f32 %v961_v56, 0.0 }
 0x2b4   :  { %v964_v60 = vsub.f32 0.0, %v963_v58  ;;  %v990_v61 = vand.u32 2147483647, %v952_v59  ;;  %v989_v19 = vmax.f32 %v952_v59, 0.0 }
 0x2b6   :  { %v965_v62 = vmul.f32 1.442695, %v964_v60  ;;  %v991_v63 = vsub.f32 0.0, %v990_v61 }
 0x2b8   :  { %1270 = vpow2.f32 %v965_v62  ;;  %v992_v0 = vmul.f32 1.442695, %v991_v63 }
 0x2ba   :  { %1272 = vpow2.f32 %v992_v0 }
 0x2c2   :  { %v1271_v1 = vpop.eup %1270 }
 0x2c3   :  { %v967_v2 = vadd.f32 1.0, %v1271_v1  ;;  %v970_v5 = vmul.f32 -0.5, %v1271_v1  ;;  %v973_v8 = vand.u32 2147483647, %v1271_v1 }
 0x2c4   :  { %v1273_v3 = vpop.eup %1272 }
 0x2c5   :  { %1274 = vlog2.f32 %v967_v2  ;;  %v994_v4 = vadd.f32 1.0, %v1273_v3  ;;  %v997_v6 = vmul.f32 -0.5, %v1273_v3  ;;  %v971_v7 = vadd.f32 1.0, %v970_v5 }
 0x2c6   :  { %v1000_v11 = vand.u32 2147483647, %v1273_v3  ;;  %vm974_vm14 = vcmp.lt.f32.partialorder %v973_v8, 0.0004427343 }
 0x2c7   :  { %1276 = vlog2.f32 %v994_v4  ;;  %v998_v9 = vadd.f32 1.0, %v997_v6  ;;  %v972_v13 = vmul.f32 %v1271_v1, %v971_v7 }
 0x2c8   :  { %vm1001_vm0 = vcmp.lt.f32.partialorder %v1000_v11, 0.0004427343 }
 0x2c9   :  { %v999_v18 = vmul.f32 %v1273_v3, %v998_v9 }
 0x2cf   :  { %v1275_v10 = vpop.eup %1274 }
 0x2d0   :  { %v969_v12 = vmul.f32 0.6931472, %v1275_v10 }
 0x2d1   :  { %v1277_v14 = vpop.eup %1276 }
 0x2d2   :  { %v975_v16 = vsel %vm974_vm14, %v972_v13, %v969_v12  ;;  %v996_v17 = vmul.f32 0.6931472, %v1277_v14 }
 0x2d3   :  { %v976_v20 = vadd.f32 %v975_v16, %v962_v15 }
 0x2d4   :  { %v1002_v21 = vsel %vm1001_vm0, %v999_v18, %v996_v17 }
 0x2d5   :  { %v979_v22 = vsel %vm978_vm15, %v976_v20, 0.0  ;;  %v1003_v23 = vadd.f32 %v1002_v21, %v989_v19 }
 0x2d6   :  { %980 = vadd.xlane.f32.xlu1 %v979_v22 }
 0x2d7   :  { %v1005_v25 = vsel %vm978_vm15, %v1003_v23, 0.0 }
 0x2da   :  { %1006 = vadd.xlane.f32.xlu1 %v1005_v25 }
 0x363   :  { %v981_v27 = vpop.xlane.xlu1 %980 }
 0x364   :  { %v982_v28 = vrot.slane %v981_v27, 4 }
 0x366   :  { %v983_v30 = vadd.f32 %v982_v28, %v981_v27 }
 0x367   :  { %v1007_v31 = vpop.xlane.xlu1 %1006 }
 0x368   :  { %v984_v32 = vrot.slane %v983_v30, 2  ;;  %v1008_v33 = vrot.slane %v1007_v31, 4 }
 0x36a   :  { %v1009_v34 = vadd.f32 %v1008_v33, %v1007_v31  ;;  %v985_v35 = vadd.f32 %v984_v32, %v983_v30 }
 0x36c   :  { %v1010_v36 = vrot.slane %v1009_v34, 2  ;;  %v986_v37 = vrot.slane %v985_v35, 1 }
 0x36e   :  { %v1011_v38 = vadd.f32 %v1010_v36, %v1009_v34  ;;  %v987_v39 = vadd.f32 %v986_v37, %v985_v35 }
 0x370   :  { %1134 = vpush %v987_v39  ;;  %v1012_v40 = vrot.slane %v1011_v38, 1 }
 0x372   :  { %v1013_v41 = vadd.f32 %v1012_v40, %v1011_v38 }
 0x374   :  { %1136 = vpush %v1013_v41 }
 0x3a1   :  { %s1135_s7 = spop %1134 }
 0x3a5   :  { %s1137_s8 = spop %1136 }
 0x3a6   :  { %s1016_s28 = sadd.f32 %s1137_s8, %s1135_s7 }
 0x3a8   :  { %s1017_s30 = ssub.f32 0.0, %s1016_s28 }
 0x3aa   :  { %s1018_s0 = smul.f32 0.125, %s1017_s30 }
 0x3ac   :  { %v1019_v43 = vstv %s1018_s0 }
 0x3ad   :  { %v1020_v44 = vadd.f32 %v1019_v43, %v1015_v42 }
 0x3af   :  { %1022 = vst.msk [vmem:[#allocation11] sm:$0x1] %vm96_vm1, %v1020_v44 }
 0x3b0   :  { %1377 = shalt.err (!%p1374_p8)
}
 0x3b1   :  { %s1378_s18 = scalar_lea.hbm %s1574_s10, 16 }
 0x3b2   :  { %p1379_p9 = scmp.ne.s32.totalorder %s1574_s10, %s1378_s18  ;;  %p1382_p10 = scmp.lt.u32.totalorder %s1378_s18, %s1574_s10 }
 0x3b4   :  { %p1384_p11 = pnand %p1382_p10, %p1379_p9 }
 0x3b6   :  { %1387 = shalt.err (!%p1384_p11)
}
 0x3b7   :  { %1032 = dma.vmem_to_hbm [thread:$0]  %s1030_s12, 16, %s1574_s10, [#allocation5]  }
 0x3b8   :  { %1394 = dma.done.wait [#allocation5], 16  }
 0x3b9   :  { %1395 = vsyncadd [#allocation5], 4294967280 }
 0x3ba   :  { %1036 = vsyncpa [#allocation4], 1 }
 0x3bb   :  { %1037 = vsyncpa [#allocation7], 1 }
 0x3bc   :  { %1038 = vsyncpa [#allocation10], 1 }
 0x3bd   :  { %1039 = vsyncpa [#allocation5], 1 }

</bundles_post_ra>
